<compile_context>
chip_gen: v5e
topology: v5e:2x2
jax: 0.10.0
libtpu: 0.0.40
codegen_flags: <defaults>
</compile_context>

<pallas_src>
import functools
import math

import numpy as np

import jax
import jax.numpy as jnp
from jax.experimental import pallas as pl
from jax.experimental.pallas import tpu as pltpu


def _source_coords(out_size, in_size, scale, mode, align_corners):
    """PyTorch F.interpolate source-index convention (scale_factor given).

    Returns (i0, i1, w1) with  resized[d] = (1-w1)*x[i0] + w1*x[i1].
    """
    d = np.arange(out_size, dtype=np.float64)
    if mode == "nearest":
        src = np.clip(np.floor(d / scale), 0, in_size - 1).astype(np.int64)
        return src, src, np.zeros(out_size, np.float64)
    if align_corners:
        s = d * ((in_size - 1) / (out_size - 1)) if out_size > 1 else np.zeros_like(d)
    else:
        s = (d + 0.5) / scale - 0.5
        s = np.maximum(s, 0.0)
    i0 = np.clip(np.floor(s).astype(np.int64), 0, in_size - 1)
    i1 = np.minimum(i0 + 1, in_size - 1)
    w1 = s - i0
    return i0, i1, w1


def _interp_matrix(in_size, out_size, scale, mode, align_corners):
    """(out_size, in_size) matrix M such that  resized = M @ signal  (one axis)."""
    i0, i1, w1 = _source_coords(out_size, in_size, scale, mode, align_corners)
    m = np.zeros((out_size, in_size), np.float32)
    rows = np.arange(out_size)
    np.add.at(m, (rows, i0), (1.0 - w1).astype(np.float32))
    np.add.at(m, (rows, i1), w1.astype(np.float32))
    return m


def _interp_kernel(x_ref, ah_ref, awt_ref, o_ref, *, tc, h, ho):
    """x_ref: (tc*H, W); ah_ref: (Ho, H); awt_ref: (W, Wo); o_ref: (tc*Ho, Wo)."""
    ah = ah_ref[...]
    awt = awt_ref[...]
    # Static unroll over the channel tile (tc <= 8 on the main path); per
    # channel: two MXU matmuls, no zero-padded / block-diagonal weights.
    for c in range(tc):
        xc = x_ref[c * h:(c + 1) * h, :].astype(jnp.float32)           # (H, W)
        t = jnp.dot(xc, awt, preferred_element_type=jnp.float32)        # (H, Wo)
        oc = jnp.dot(ah, t, preferred_element_type=jnp.float32)         # (Ho, Wo)
        o_ref[c * ho:(c + 1) * ho, :] = oc.astype(o_ref.dtype)


def _pick_channel_tile(C, H, Ho, in_bytes_per_row, out_bytes_per_row,
                       budget=24 << 20):
    """Largest divisor of C (<=8) giving 8-aligned, VMEM-friendly blocks."""
    def aligned(tc):
        # Blocks equal to the full array dims need no (8,128) alignment.
        return tc == C or ((tc * H) % 8 == 0 and (tc * Ho) % 8 == 0)

    def block_bytes(tc):
        # Double-buffered input + output blocks.
        return 2 * tc * (H * in_bytes_per_row + Ho * out_bytes_per_row)

    for tc in range(min(C, 8), 0, -1):
        if C % tc == 0 and aligned(tc) and block_bytes(tc) <= budget:
            return tc
    # Rare fallback (no small divisor of C makes tc*H / tc*Ho 8-aligned):
    # smallest aligned divisor of C; tc == C always qualifies.
    for tc in range(1, C + 1):
        if C % tc == 0 and aligned(tc):
            return tc
    return C


def interpolate(x, scale_factor, mode="bilinear", align_corners=False):
    """Pallas equivalent of torch.nn.functional.interpolate on NCHW input."""
    if mode not in ("bilinear", "nearest"):
        # TODO(synk): bicubic / area / nearest-exact modes are not implemented.
        raise NotImplementedError(f"mode={mode!r}")

    N, C, H, W = x.shape
    Ho = int(math.floor(H * scale_factor))
    Wo = int(math.floor(W * scale_factor))

    ah = jnp.asarray(_interp_matrix(H, Ho, scale_factor, mode, align_corners))     # (Ho, H)
    awt = jnp.asarray(_interp_matrix(W, Wo, scale_factor, mode, align_corners).T)  # (W, Wo)

    itemsize = x.dtype.itemsize
    tc = _pick_channel_tile(C, H, Ho, W * itemsize, Wo * itemsize)

    x2 = x.reshape(N, C * H, W)   # free view of contiguous NCHW

    # Only raise the scoped-VMEM limit when the (rare) fallback tile needs it.
    vmem_est = (2 * tc * (H * W + Ho * Wo) * itemsize
                + 2 * (ah.size + awt.size) * 4 + (1 << 20))
    vmem_limit = min(int(vmem_est * 1.25), 64 << 20) if vmem_est > (30 << 20) else None

    out = pl.pallas_call(
        functools.partial(_interp_kernel, tc=tc, h=H, ho=Ho),
        out_shape=jax.ShapeDtypeStruct((N, C * Ho, Wo), x.dtype),
        grid=(N, C // tc),
        in_specs=[
            pl.BlockSpec((None, tc * H, W), lambda n, c: (n, c, 0)),
            pl.BlockSpec((Ho, H), lambda n, c: (0, 0)),
            pl.BlockSpec((W, Wo), lambda n, c: (0, 0)),
        ],
        out_specs=pl.BlockSpec((None, tc * Ho, Wo), lambda n, c: (n, c, 0)),
        compiler_params=pltpu.CompilerParams(
            dimension_semantics=("parallel", "parallel"),
            vmem_limit_bytes=vmem_limit),
    )(x2, ah, awt)

    return out.reshape(N, C, Ho, Wo)


def _interpolate_ref(x, scale_factor, mode, align_corners):
    """Gather-based pure-JAX reference of PyTorch F.interpolate (NCHW)."""
    N, C, H, W = x.shape
    Ho = int(math.floor(H * scale_factor))
    Wo = int(math.floor(W * scale_factor))
    h0, h1, wh = _source_coords(Ho, H, scale_factor, mode, align_corners)
    w0, w1, ww = _source_coords(Wo, W, scale_factor, mode, align_corners)
    wh = jnp.asarray(wh, x.dtype)[None, None, :, None]
    ww = jnp.asarray(ww, x.dtype)[None, None, None, :]
    xh = x[:, :, h0, :] * (1 - wh) + x[:, :, h1, :] * wh              # (N,C,Ho,W)
    return xh[:, :, :, w0] * (1 - ww) + xh[:, :, :, w1] * ww          # (N,C,Ho,Wo)


if __name__ == "__main__":
    key = jax.random.PRNGKey(0)
    N, C, H, W = 2, 4, 16, 16
    scale = 2
    x = jax.random.normal(key, (N, C, H, W), dtype=jnp.float32)

    for mode, align in (("bilinear", False), ("bilinear", True), ("nearest", False)):
        out = jax.block_until_ready(interpolate(x, scale, mode, align))
        ref = _interpolate_ref(x, scale, mode, align)
        assert out.shape == (N, C, H * scale, W * scale)
        assert jnp.allclose(out, ref, atol=1e-5, rtol=1e-5), \
            f"mismatch vs reference (mode={mode}, align_corners={align})"

    print("KERNEL_OK")
</pallas_src>

<mosaic_0001>
module attributes {stable_mosaic.version = 11 : i64} {
  func.func @_interp_kernel(%arg0: i32, %arg1: i32, %arg2: memref<1x64x16xf32, #tpu.memory_space<vmem>>, %arg3: memref<32x16xf32, #tpu.memory_space<vmem>>, %arg4: memref<16x32xf32, #tpu.memory_space<vmem>>, %arg5: memref<1x128x32xf32, #tpu.memory_space<vmem>>) attributes {dimension_semantics = [#tpu.dimension_semantics<parallel>, #tpu.dimension_semantics<parallel>], iteration_bounds = array<i64: 2, 1>, scalar_prefetch = 0 : i64, scratch_operands = 0 : i64, tpu.core_type = #tpu.core_type<tc>, window_params = [{transform_indices = @transform_0, window_bounds = array<i64: 1, 64, 16>}, {pipeline_mode = #tpu.pipeline_mode<synchronous>, transform_indices = @transform_1, window_bounds = array<i64: 32, 16>}, {pipeline_mode = #tpu.pipeline_mode<synchronous>, transform_indices = @transform_2, window_bounds = array<i64: 16, 32>}, {transform_indices = @transform_3, window_bounds = array<i64: 1, 128, 32>}]} {
    %c0 = arith.constant 0 : index
    %c0_0 = arith.constant 0 : index
    %0 = vector.load %arg3[%c0, %c0_0] : memref<32x16xf32, #tpu.memory_space<vmem>>, vector<32x16xf32>
    %c0_1 = arith.constant 0 : index
    %c0_2 = arith.constant 0 : index
    %1 = vector.load %arg4[%c0_1, %c0_2] : memref<16x32xf32, #tpu.memory_space<vmem>>, vector<16x32xf32>
    %c0_3 = arith.constant 0 : index
    %c0_4 = arith.constant 0 : index
    %c0_5 = arith.constant 0 : index
    %2 = vector.load %arg2[%c0_3, %c0_4, %c0_5] : memref<1x64x16xf32, #tpu.memory_space<vmem>>, vector<1x16x16xf32>
    %3 = vector.shape_cast %2 : vector<1x16x16xf32> to vector<16x16xf32>
    %cst = arith.constant dense<0.000000e+00> : vector<16x32xf32>
    %4 = tpu.matmul %3, %1, %cst {dimension_numbers = #tpu.dot_dimension_numbers<[1], [0], [0], [1], [0, 0, 1, 1], [], []>} : vector<16x16xf32>, vector<16x32xf32>, vector<16x32xf32> -> vector<16x32xf32>
    %cst_6 = arith.constant dense<0.000000e+00> : vector<32x32xf32>
    %5 = tpu.matmul %0, %4, %cst_6 {dimension_numbers = #tpu.dot_dimension_numbers<[1], [0], [0], [1], [0, 0, 1, 1], [], []>} : vector<32x16xf32>, vector<16x32xf32>, vector<32x32xf32> -> vector<32x32xf32>
    %c0_7 = arith.constant 0 : index
    %c0_8 = arith.constant 0 : index
    %c0_9 = arith.constant 0 : index
    %6 = vector.load %arg5[%c0_7, %c0_8, %c0_9] : memref<1x128x32xf32, #tpu.memory_space<vmem>>, vector<1x32x32xf32>
    %7 = vector.shape_cast %6 : vector<1x32x32xf32> to vector<32x32xf32>
    %8 = vector.shape_cast %5 : vector<32x32xf32> to vector<1x32x32xf32>
    tpu.vector_store %arg5[%c0_7, %c0_8, %c0_9], %8 {strides = array<i32>} : memref<1x128x32xf32, #tpu.memory_space<vmem>>, vector<1x32x32xf32>,
    %c0_10 = arith.constant 0 : index
    %c16 = arith.constant 16 : index
    %c0_11 = arith.constant 0 : index
    %9 = vector.load %arg2[%c0_10, %c16, %c0_11] : memref<1x64x16xf32, #tpu.memory_space<vmem>>, vector<1x16x16xf32>
    %10 = vector.shape_cast %9 : vector<1x16x16xf32> to vector<16x16xf32>
    %cst_12 = arith.constant dense<0.000000e+00> : vector<16x32xf32>
    %11 = tpu.matmul %10, %1, %cst_12 {dimension_numbers = #tpu.dot_dimension_numbers<[1], [0], [0], [1], [0, 0, 1, 1], [], []>} : vector<16x16xf32>, vector<16x32xf32>, vector<16x32xf32> -> vector<16x32xf32>
    %cst_13 = arith.constant dense<0.000000e+00> : vector<32x32xf32>
    %12 = tpu.matmul %0, %11, %cst_13 {dimension_numbers = #tpu.dot_dimension_numbers<[1], [0], [0], [1], [0, 0, 1, 1], [], []>} : vector<32x16xf32>, vector<16x32xf32>, vector<32x32xf32> -> vector<32x32xf32>
    %c0_14 = arith.constant 0 : index
    %c32 = arith.constant 32 : index
    %c0_15 = arith.constant 0 : index
    %13 = vector.load %arg5[%c0_14, %c32, %c0_15] : memref<1x128x32xf32, #tpu.memory_space<vmem>>, vector<1x32x32xf32>
    %14 = vector.shape_cast %13 : vector<1x32x32xf32> to vector<32x32xf32>
    %15 = vector.shape_cast %12 : vector<32x32xf32> to vector<1x32x32xf32>
    tpu.vector_store %arg5[%c0_14, %c32, %c0_15], %15 {strides = array<i32>} : memref<1x128x32xf32, #tpu.memory_space<vmem>>, vector<1x32x32xf32>,
    %c0_16 = arith.constant 0 : index
    %c32_17 = arith.constant 32 : index
    %c0_18 = arith.constant 0 : index
    %16 = vector.load %arg2[%c0_16, %c32_17, %c0_18] : memref<1x64x16xf32, #tpu.memory_space<vmem>>, vector<1x16x16xf32>
    %17 = vector.shape_cast %16 : vector<1x16x16xf32> to vector<16x16xf32>
    %cst_19 = arith.constant dense<0.000000e+00> : vector<16x32xf32>
    %18 = tpu.matmul %17, %1, %cst_19 {dimension_numbers = #tpu.dot_dimension_numbers<[1], [0], [0], [1], [0, 0, 1, 1], [], []>} : vector<16x16xf32>, vector<16x32xf32>, vector<16x32xf32> -> vector<16x32xf32>
    %cst_20 = arith.constant dense<0.000000e+00> : vector<32x32xf32>
    %19 = tpu.matmul %0, %18, %cst_20 {dimension_numbers = #tpu.dot_dimension_numbers<[1], [0], [0], [1], [0, 0, 1, 1], [], []>} : vector<32x16xf32>, vector<16x32xf32>, vector<32x32xf32> -> vector<32x32xf32>
    %c0_21 = arith.constant 0 : index
    %c64 = arith.constant 64 : index
    %c0_22 = arith.constant 0 : index
    %20 = vector.load %arg5[%c0_21, %c64, %c0_22] : memref<1x128x32xf32, #tpu.memory_space<vmem>>, vector<1x32x32xf32>
    %21 = vector.shape_cast %20 : vector<1x32x32xf32> to vector<32x32xf32>
    %22 = vector.shape_cast %19 : vector<32x32xf32> to vector<1x32x32xf32>
    tpu.vector_store %arg5[%c0_21, %c64, %c0_22], %22 {strides = array<i32>} : memref<1x128x32xf32, #tpu.memory_space<vmem>>, vector<1x32x32xf32>,
    %c0_23 = arith.constant 0 : index
    %c48 = arith.constant 48 : index
    %c0_24 = arith.constant 0 : index
    %23 = vector.load %arg2[%c0_23, %c48, %c0_24] : memref<1x64x16xf32, #tpu.memory_space<vmem>>, vector<1x16x16xf32>
    %24 = vector.shape_cast %23 : vector<1x16x16xf32> to vector<16x16xf32>
    %cst_25 = arith.constant dense<0.000000e+00> : vector<16x32xf32>
    %25 = tpu.matmul %24, %1, %cst_25 {dimension_numbers = #tpu.dot_dimension_numbers<[1], [0], [0], [1], [0, 0, 1, 1], [], []>} : vector<16x16xf32>, vector<16x32xf32>, vector<16x32xf32> -> vector<16x32xf32>
    %cst_26 = arith.constant dense<0.000000e+00> : vector<32x32xf32>
    %26 = tpu.matmul %0, %25, %cst_26 {dimension_numbers = #tpu.dot_dimension_numbers<[1], [0], [0], [1], [0, 0, 1, 1], [], []>} : vector<32x16xf32>, vector<16x32xf32>, vector<32x32xf32> -> vector<32x32xf32>
    %c0_27 = arith.constant 0 : index
    %c96 = arith.constant 96 : index
    %c0_28 = arith.constant 0 : index
    %27 = vector.load %arg5[%c0_27, %c96, %c0_28] : memref<1x128x32xf32, #tpu.memory_space<vmem>>, vector<1x32x32xf32>
    %28 = vector.shape_cast %27 : vector<1x32x32xf32> to vector<32x32xf32>
    %29 = vector.shape_cast %26 : vector<32x32xf32> to vector<1x32x32xf32>
    tpu.vector_store %arg5[%c0_27, %c96, %c0_28], %29 {strides = array<i32>} : memref<1x128x32xf32, #tpu.memory_space<vmem>>, vector<1x32x32xf32>,
    return
  }
  func.func @transform_0(%arg0: i32, %arg1: i32) -> (i32, i32, i32) {
    %c0_i32 = arith.constant 0 : i32
    %c0_i32_0 = arith.constant 0 : i32
    return %arg0, %arg1, %c0_i32 : i32, i32, i32
  }
  func.func @transform_1(%arg0: i32, %arg1: i32) -> (i32, i32) {
    %c0_i32 = arith.constant 0 : i32
    %c0_i32_0 = arith.constant 0 : i32
    %c0_i32_1 = arith.constant 0 : i32
    return %c0_i32, %c0_i32_0 : i32, i32
  }
  func.func @transform_2(%arg0: i32, %arg1: i32) -> (i32, i32) {
    %c0_i32 = arith.constant 0 : i32
    %c0_i32_0 = arith.constant 0 : i32
    %c0_i32_1 = arith.constant 0 : i32
    return %c0_i32, %c0_i32_0 : i32, i32
  }
  func.func @transform_3(%arg0: i32, %arg1: i32) -> (i32, i32, i32) {
    %c0_i32 = arith.constant 0 : i32
    %c0_i32_0 = arith.constant 0 : i32
    return %arg0, %arg1, %c0_i32 : i32, i32, i32
  }
}

</mosaic_0001>

<bundles_post_ra>
// kernel: tpu_custom_call.1
= control target key start
LH: loop header
LB: loop body
LE: loop exit
PB: predicated region body
PF: predicated region fallthrough
CT: control target
= control target key end

     0   :  { %s680_s12 = smov 0   ;;  %s682_s13 = smov 0   ;;  %s793_s0 = inlined_call_operand.vmem [shape: f32[2,64,16], index: 0, kind: input, shape index: {}]   ;;  %s794_s1 = inlined_call_operand.vmem [shape: f32[32,16], index: 1, kind: input, shape index: {}]   ;;  %s795_s2 = inlined_call_operand.vmem [shape: f32[16,32], index: 2, kind: input, shape index: {}]   ;;  %s796_s3 = inlined_call_operand.vmem [shape: f32[2,128,32], index: 3, kind: output, shape index: {}]  }
   0x1   :  { %s684_s14 = smov 0  }
   0x2 LB: > { %s25_s15 = sadd.s32 1, %s654_s13  ;;  %p577_p0 = scmp.ge.s32.totalorder %s658_s14, 1  ;;  %s658_s14 = sphi %s684_s14, %s13_s14   ;;  %s654_s13 = sphi %s682_s13, %s798_s13   ;;  %s650_s12 = sphi %s680_s12, %s797_s12  }
   0x3   : > { %p27_p1 = scmp.ge.s32.totalorder %s25_s15, 2  ;;  %p158_p2 = scmp.lt.s32.totalorder %s658_s14, 3 }
   0x5   : > { %s800_s15 = smov (%p27_p1, %s25_s15), 0  ;;  %p159_p3 = pnand %p577_p0, %p158_p2 }
   0x6   : > { %p191_p4 = scmp.lt.s32.totalorder (!%p159_p3), %s650_s12, 1 }
   0x7   : > { %162 = sbr.rel (%p159_p3) target bundleno = 336 (0x150), region = 32 }
   0xc   : > { %v215_v0 = vld [vmem:[%s795_s2 + $0x8] sm:$0xff]  ;;  %v214_v1 = vld [vmem:[%s795_s2] sm:$0xff]  ;;  %s802_s12 = smov (!%p191_p4, %s650_s12), 1  ;;  %vm218_vm0 = vcmask 130048   ;;  %v212_v13 = vld [vmem:[%s794_s1 + $0x10] sm:$0xff]  ;;  %vm289_vm1 = vcmask 261120  }
   0xd   : > { %239 = vmatpush.msra.mxu0 %v215_v0  ;;  %316 = vmatpush.msra.mxu2 %v215_v0  ;;  %s608_s20 = sshll.u32 %s802_s12, 6  ;;  %v210_v14 = vld [vmem:[%s794_s1] sm:$0xff]  ;;  %v213_v17 = vld [vmem:[%s794_s1 + $0x18] sm:$0xff]  ;;  %v211_v18 = vld [vmem:[%s794_s1 + $0x8] sm:$0xff]  ;;  %s609_s5 = sshll.u32 %s802_s12, 7 }
   0xe   : > { %s198_s23 = scalar_lea.vmem %s793_s0, %s608_s20  ;;  %s750_s8 = scalar_lea.vmem %s796_s3, %s609_s5 }
   0xf   : > { %240 = vmatpush.msra.mxu0 %v214_v1  ;;  %317 = vmatpush.msra.mxu2 %v214_v1  ;;  %v216_v2 = vld [vmem:[%s198_s23] sm:$0xff]  ;;  %v294_v3 = vld [vmem:[%s198_s23 + $0x10] sm:$0xff]  ;;  %v217_v4 = vld [vmem:[%s198_s23 + $0x8] sm:$0xff] }
  0x10   : > { %582 = vmatmul.msk.f32.vlgmr.msra.gmra.mxu0 %vm218_vm0, %v216_v2  ;;  %588 = vmatmul.msk.f32.vlgmr.msra.gmra.mxu2 %vm218_vm0, %v294_v3  ;;  %v295_v5 = vld [vmem:[%s198_s23 + $0x18] sm:$0xff]  ;;  %v358_v6 = vld [vmem:[%s198_s23 + $0x20] sm:$0xff]  ;;  %v359_v7 = vld [vmem:[%s198_s23 + $0x28] sm:$0xff] }
  0x11   : > { %380 = vmatpush.msrb.mxu0 %v215_v0  ;;  %v422_v8 = vld [vmem:[%s198_s23 + $0x30] sm:$0xff]  ;;  %v423_v9 = vld [vmem:[%s198_s23 + $0x38] sm:$0xff] }
  0x13   : > { %381 = vmatpush.msrb.mxu0 %v214_v1 }
  0x15   : > { %444 = vmatpush.msra.mxu0 %v215_v0 }
  0x17   : > { %445 = vmatpush.msra.mxu0 %v214_v1 }
  0x18   : > { %583 = vmatmul.msk.f32.gmra.mxu0 %vm218_vm0, %v217_v4  ;;  %589 = vmatmul.msk.f32.gmra.mxu2 %vm218_vm0, %v295_v5 }
  0x20   : > { %594 = vmatmul.msk.f32.vlgmr.msrb.gmra.mxu0 %vm218_vm0, %v358_v6 }
  0x28   : > { %595 = vmatmul.msk.f32.gmra.mxu0 %vm218_vm0, %v359_v7 }
  0x30   : > { %600 = vmatmul.msk.f32.vlgmr.msra.gmra.mxu0 %vm218_vm0, %v422_v8 }
  0x38   : > { %601 = vmatmul.msk.f32.gmra.mxu0 %vm218_vm0, %v423_v9 }
  0x8d   : > { %v242_v10 = vpop.f32.mrf.mxu0 }
  0x93   : > { %v319_v11 = vpop.f32.mrf.mxu2 }
  0x95   : > { %v245_v12 = vpop.f32.mrf.mxu0 }
  0x96   : > { %274 = vmatpush.msra.mxu1 %v245_v12  ;;  %610 = vmatpush.msra.mxu3 %v245_v12 }
  0x98   : > { %275 = vmatpush.msra.mxu1 %v242_v10  ;;  %611 = vmatpush.msra.mxu3 %v242_v10 }
  0x99   : > { %586 = vmatmul.msk.f32.vlgmr.msra.gmra.mxu3 %vm218_vm0, %v212_v13  ;;  %584 = vmatmul.msk.f32.vlgmr.msra.gmra.mxu1 %vm218_vm0, %v210_v14 }
  0x9b   : > { %v322_v15 = vpop.f32.mrf.mxu2 }
  0x9c   : > { %339 = vmatpush.msrb.mxu3 %v322_v15 }
  0x9d   : > { %v383_v16 = vpop.f32.mrf.mxu0 }
  0x9e   : > { %340 = vmatpush.msrb.mxu3 %v319_v11 }
  0xa1   : > { %587 = vmatmul.msk.f32.gmra.mxu3 %vm218_vm0, %v213_v17  ;;  %585 = vmatmul.msk.f32.gmra.mxu1 %vm218_vm0, %v211_v18 }
  0xa5   : > { %v386_v19 = vpop.f32.mrf.mxu0 }
  0xa6   : > { %403 = vmatpush.msrb.mxu2 %v386_v19 }
  0xa8   : > { %404 = vmatpush.msrb.mxu2 %v383_v16 }
  0xa9   : > { %590 = vmatmul.msk.f32.vlgmr.msrb.gmra.mxu3 %vm218_vm0, %v210_v14  ;;  %596 = vmatmul.msk.f32.vlgmr.msrb.gmra.mxu2 %vm218_vm0, %v210_v14 }
  0xad   : > { %v447_v20 = vpop.f32.mrf.mxu0 }
  0xb1   : > { %591 = vmatmul.msk.f32.gmra.mxu3 %vm218_vm0, %v211_v18  ;;  %597 = vmatmul.msk.f32.gmra.mxu2 %vm218_vm0, %v211_v18 }
  0xb5   : > { %v450_v21 = vpop.f32.mrf.mxu0 }
  0xb6   : > { %467 = vmatpush.msrb.mxu1 %v450_v21 }
  0xb8   : > { %468 = vmatpush.msrb.mxu1 %v447_v20 }
  0xb9   : > { %602 = vmatmul.msk.f32.vlgmr.msrb.gmra.mxu1 %vm218_vm0, %v210_v14  ;;  %592 = vmatmul.msk.f32.gmra.mxu3 %vm218_vm0, %v212_v13 }
  0xba   : > { %598 = vmatmul.msk.f32.gmra.mxu2 %vm218_vm0, %v212_v13 }
  0xc1   : > { %603 = vmatmul.msk.f32.gmra.mxu1 %vm218_vm0, %v211_v18  ;;  %593 = vmatmul.msk.f32.gmra.mxu3 %vm218_vm0, %v213_v17 }
  0xc2   : > { %599 = vmatmul.msk.f32.gmra.mxu2 %vm218_vm0, %v213_v17 }
  0xc9   : > { %604 = vmatmul.msk.f32.gmra.mxu1 %vm218_vm0, %v212_v13 }
  0xd1   : > { %605 = vmatmul.msk.f32.gmra.mxu1 %vm218_vm0, %v213_v17 }
 0x116   : > { %v277_v22 = vpop.f32.mrf.mxu1 }
 0x117   : > { %290 = vst.msk [vmem:[%s750_s8] sm:$0xff] %vm289_vm1, %v277_v22 }
 0x11c   : > { %v283_v23 = vpop.f32.mrf.mxu3 }
 0x11d   : > { %292 = vst.msk [vmem:[%s750_s8 + $0x10] sm:$0xff] %vm289_vm1, %v283_v23 }
 0x11e   : > { %v280_v24 = vpop.f32.mrf.mxu1 }
 0x11f   : > { %291 = vst.msk [vmem:[%s750_s8 + $0x8] sm:$0xff] %vm289_vm1, %v280_v24 }
 0x124   : > { %v286_v25 = vpop.f32.mrf.mxu3 }
 0x125   : > { %293 = vst.msk [vmem:[%s750_s8 + $0x18] sm:$0xff] %vm289_vm1, %v286_v25 }
 0x12c   : > { %v342_v26 = vpop.f32.mrf.mxu3  ;;  %v406_v27 = vpop.f32.mrf.mxu2 }
 0x12d   : > { %354 = vst.msk [vmem:[%s750_s8 + $0x20] sm:$0xff] %vm289_vm1, %v342_v26 }
 0x12e   : > { %418 = vst.msk [vmem:[%s750_s8 + $0x40] sm:$0xff] %vm289_vm1, %v406_v27 }
 0x134   : > { %v345_v28 = vpop.f32.mrf.mxu3  ;;  %v409_v29 = vpop.f32.mrf.mxu2 }
 0x135   : > { %355 = vst.msk [vmem:[%s750_s8 + $0x28] sm:$0xff] %vm289_vm1, %v345_v28 }
 0x136   : > { %v470_v30 = vpop.f32.mrf.mxu1  ;;  %419 = vst.msk [vmem:[%s750_s8 + $0x48] sm:$0xff] %vm289_vm1, %v409_v29 }
 0x137   : > { %482 = vst.msk [vmem:[%s750_s8 + $0x60] sm:$0xff] %vm289_vm1, %v470_v30 }
 0x13c   : > { %v348_v31 = vpop.f32.mrf.mxu3 }
 0x13d   : > { %356 = vst.msk [vmem:[%s750_s8 + $0x30] sm:$0xff] %vm289_vm1, %v348_v31  ;;  %v412_v32 = vpop.f32.mrf.mxu2 }
 0x13e   : > { %v473_v33 = vpop.f32.mrf.mxu1  ;;  %420 = vst.msk [vmem:[%s750_s8 + $0x50] sm:$0xff] %vm289_vm1, %v412_v32 }
 0x13f   : > { %483 = vst.msk [vmem:[%s750_s8 + $0x68] sm:$0xff] %vm289_vm1, %v473_v33 }
 0x144   : > { %v351_v34 = vpop.f32.mrf.mxu3 }
 0x145   : > { %357 = vst.msk [vmem:[%s750_s8 + $0x38] sm:$0xff] %vm289_vm1, %v351_v34  ;;  %v415_v35 = vpop.f32.mrf.mxu2 }
 0x146   : > { %v476_v36 = vpop.f32.mrf.mxu1  ;;  %421 = vst.msk [vmem:[%s750_s8 + $0x58] sm:$0xff] %vm289_vm1, %v415_v35 }
 0x147   : > { %484 = vst.msk [vmem:[%s750_s8 + $0x70] sm:$0xff] %vm289_vm1, %v476_v36 }
 0x14e   : > { %v479_v37 = vpop.f32.mrf.mxu1 }
 0x14f   : > { %485 = vst.msk [vmem:[%s750_s8 + $0x78] sm:$0xff] %vm289_vm1, %v479_v37 }
 0x150 PF: > { %s13_s14 = sadd.s32 1, %s658_s14   ;;  %s797_s12 = smov %s654_s13 }
 0x151   : > { %p10_p5 = scmp.ge.s32.totalorder %s13_s14, 4   ;;  %s798_s13 = smov %s800_s15 }
 0x153   :  { %12 = sbr.rel (!%p10_p5) target bundleno = 2 (0x2), region = 62 }

</bundles_post_ra>
